<compile_context>
chip_gen: v7x
topology: tpu7x:2x2x1
jax: 0.10.0
libtpu: 0.0.40
codegen_flags: <defaults>
</compile_context>

<pallas_src>
import jax
import jax.numpy as jnp
from jax.experimental import pallas as pl
from jax.experimental.pallas import tpu as pltpu


def _round_up(a: int, b: int) -> int:
    return (a + b - 1) // b * b


def _cdiv(a: int, b: int) -> int:
    return (a + b - 1) // b


def _pick_tile(n: int, tm_request: int) -> int:
    """Row tile: multiple of 8, >=2 grid blocks when possible (v7x megacore
    sharding), and dividing n when that costs at most a 2x tile shrink
    (avoids the post-kernel out[:N] slice copy)."""
    half = _round_up(_cdiv(n, 2), 8) if n > 8 else 8
    tm_max = max(8, min(tm_request, half, _round_up(n, 8)))
    tm_max -= tm_max % 8
    tm_max = max(8, tm_max)
    lo = max(8, (tm_max // 2) - (tm_max // 2) % 8)
    for cand in range(tm_max, lo - 1, -8):
        if n % cand == 0:
            return cand
    return tm_max


def _fused_gather_kernel(ids_ref, tab_ref, o_ref):
    # Gather + transform fused into a single MXU matmul:
    #   out_tile = onehot(ids) @ (emb_table @ T)      (table resident in VMEM)
    ids = ids_ref[...]                                   # (tm, 1) int32
    tm = ids.shape[0]
    v = tab_ref.shape[0]
    onehot = (ids == jax.lax.broadcasted_iota(jnp.int32, (tm, v), 1)
              ).astype(tab_ref.dtype)                    # (tm, V)
    o_ref[...] = jnp.dot(
        onehot, tab_ref[...], preferred_element_type=jnp.float32
    ).astype(o_ref.dtype)


def _matmul_kernel(e_ref, t_ref, o_ref):
    # One MXU matmul per token tile against the folded (D, D) transform.
    o_ref[...] = jnp.dot(
        e_ref[...], t_ref[...], preferred_element_type=jnp.float32
    ).astype(o_ref.dtype)


def orthogonal_projected_token_embedding(x, emb_table, w_t, q1, w_p, q2,
                                         *, inverse=False, project=True,
                                         tm=2048,
                                         compute_dtype=jnp.bfloat16,
                                         out_dtype=jnp.float32,
                                         fuse_gather=None):
    """x: (B, S) int32 token ids -> (B, S, D) out_dtype."""
    B, S = x.shape
    V, D = emb_table.shape
    N = B * S

    # ---- Fold all constant (D, D) work once in the wrapper (tiny D^3) -----
    t = jnp.dot(w_t, q1)
    if inverse:
        t = t.T
    if project:
        t = jnp.dot(t, jnp.dot(w_p, q2))

    # ---- Row tiling --------------------------------------------------------
    tile = _pick_tile(N, tm)
    n_pad = _round_up(N, tile)
    grid = (n_pad // tile,)

    ids = x.reshape(-1).astype(jnp.int32)
    if n_pad != N:
        ids = jnp.pad(ids, (0, n_pad - N))        # token 0 is always a valid row

    cb = jnp.dtype(compute_dtype).itemsize
    ob = jnp.dtype(out_dtype).itemsize

    if fuse_gather is None:
        # Resident-table + one-hot MXU gather only pays off (and stays VMEM /
        # MXU cheap) for small vocabularies.
        fuse_gather = V <= 512

    if fuse_gather:
        # Fold the table through T once; kernel fuses gather + transform.
        table_t = jnp.dot(emb_table, t).astype(compute_dtype)       # (V, D)
        ids_2d = ids.reshape(n_pad, 1)
        footprint = (2 * tile * 4                 # ids tile (double-buffered)
                     + 2 * V * D * cb             # resident table
                     + 2 * tile * D * ob          # output tile
                     + tile * V * cb)             # one-hot intermediate
        kernel = _fused_gather_kernel
        operands = (ids_2d, table_t)
        in_specs = [
            pl.BlockSpec((tile, 1), lambda i: (i, 0)),   # token ids
            pl.BlockSpec((V, D), lambda i: (0, 0)),      # resident table @ T
        ]
    else:
        # Large-vocab fallback: XLA gather, but emit compute_dtype rows so the
        # kernel's HBM reads are halved at bf16.
        # TODO(synk): replace with an in-kernel DMA row-gather for huge V.
        embed = jnp.take(emb_table, ids, axis=0).astype(compute_dtype)
        t_c = t.astype(compute_dtype)
        footprint = (2 * tile * D * cb + 2 * D * D * cb + 2 * tile * D * ob)
        kernel = _matmul_kernel
        operands = (embed, t_c)
        in_specs = [
            pl.BlockSpec((tile, D), lambda i: (i, 0)),   # token rows
            pl.BlockSpec((D, D), lambda i: (0, 0)),      # folded transform T
        ]

    # Only raise the scoped-VMEM limit when the computed footprint needs it
    # (v5e default scoped limit is 16 MiB); stay well under v7x's 64 MiB.
    vmem_limit = None
    if footprint + (2 << 20) > (16 << 20):
        vmem_limit = min(footprint + (4 << 20), 48 << 20)

    out = pl.pallas_call(
        kernel,
        out_shape=jax.ShapeDtypeStruct((n_pad, D), out_dtype),
        grid_spec=pltpu.PrefetchScalarGridSpec(
            num_scalar_prefetch=0,
            grid=grid,
            in_specs=in_specs,
            out_specs=pl.BlockSpec((tile, D), lambda i: (i, 0)),
        ),
        compiler_params=pltpu.CompilerParams(
            dimension_semantics=("parallel",),
            vmem_limit_bytes=vmem_limit,
        ),
    )(*operands)

    if n_pad != N:
        out = out[:N]
    return out.reshape(B, S, D)


def _init_params(key, vocab_size, d_model):
    k_emb, k_q1, k_q2 = jax.random.split(key, 3)
    # nn.Embedding default init: N(0, 1)
    emb_table = jax.random.normal(k_emb, (vocab_size, d_model), jnp.float32)
    # orthogonal buffers via QR of a random Gaussian matrix
    q1, _ = jnp.linalg.qr(jax.random.normal(k_q1, (d_model, d_model),
                                            jnp.float32))
    q2, _ = jnp.linalg.qr(jax.random.normal(k_q2, (d_model, d_model),
                                            jnp.float32))
    # transform weights initialized to identity (as in the module __init__)
    w_t = jnp.eye(d_model, dtype=jnp.float32)
    w_p = jnp.eye(d_model, dtype=jnp.float32)
    return emb_table, w_t, q1, w_p, q2


if __name__ == "__main__":
    B, S = 2, 8
    vocab_size, d_model = 64, 128

    key = jax.random.PRNGKey(0)
    k_params, k_tok = jax.random.split(key)
    emb_table, w_t, q1, w_p, q2 = _init_params(k_params, vocab_size, d_model)
    x = jax.random.randint(k_tok, (B, S), 0, vocab_size, dtype=jnp.int32)

    # Pure-JAX f32 reference, mirroring the module's op order
    # (default forward path: inverse=False, project=True).
    embed_ref = jnp.take(emb_table, x.reshape(-1), axis=0)
    t1_ref = w_t @ q1
    t2_ref = w_p @ q2
    ref = ((embed_ref @ t1_ref) @ t2_ref).reshape(B, S, d_model)

    # 1) Default fast path: fused gather, bf16 compute, f32 accumulation.
    out = orthogonal_projected_token_embedding(x, emb_table, w_t, q1, w_p, q2)
    out = jax.block_until_ready(out)
    assert out.shape == (B, S, d_model)
    assert jnp.allclose(out, ref, atol=2e-2, rtol=2e-2), \
        "mismatch vs reference (fused bf16 path)"

    # 2) f32 compute path (tight tolerance), still fused.
    out_f32 = orthogonal_projected_token_embedding(
        x, emb_table, w_t, q1, w_p, q2, compute_dtype=jnp.float32)
    out_f32 = jax.block_until_ready(out_f32)
    assert jnp.allclose(out_f32, ref, atol=1e-3, rtol=1e-3), \
        "mismatch vs reference (fused f32 path)"

    # 3) Large-vocab fallback path + inverse / no-project flags.
    out_inv = orthogonal_projected_token_embedding(
        x, emb_table, w_t, q1, w_p, q2, inverse=True, project=False,
        compute_dtype=jnp.float32, fuse_gather=False)
    out_inv = jax.block_until_ready(out_inv)
    ref_inv = (embed_ref @ t1_ref.T).reshape(B, S, d_model)
    assert jnp.allclose(out_inv, ref_inv, atol=1e-3, rtol=1e-3), \
        "mismatch vs reference (inverse, no project, fallback path)"

    print("KERNEL_OK")
</pallas_src>

<mosaic_0001>
module attributes {stable_mosaic.version = 11 : i64} {
  func.func @_fused_gather_kernel(%arg0: i32, %arg1: memref<8x1xi32, #tpu.memory_space<vmem>>, %arg2: memref<64x128xbf16, #tpu.memory_space<vmem>>, %arg3: memref<8x128xf32, #tpu.memory_space<vmem>>) attributes {dimension_semantics = [#tpu.dimension_semantics<parallel>], iteration_bounds = array<i64: 2>, scalar_prefetch = 0 : i64, scratch_operands = 0 : i64, tpu.core_type = #tpu.core_type<tc>, window_params = [{transform_indices = @transform_0, window_bounds = array<i64: 8, 1>}, {pipeline_mode = #tpu.pipeline_mode<synchronous>, transform_indices = @transform_1, window_bounds = array<i64: 64, 128>}, {transform_indices = @transform_2, window_bounds = array<i64: 8, 128>}]} {
    %c0 = arith.constant 0 : index
    %c0_0 = arith.constant 0 : index
    %0 = vector.load %arg1[%c0, %c0_0] : memref<8x1xi32, #tpu.memory_space<vmem>>, vector<8x1xi32>
    %1 = tpu.iota {dimensions = array<i32: 1>} : vector<8x64xi32>
    %2 = vector.broadcast %0 : vector<8x1xi32> to vector<8x64xi32>
    %3 = arith.cmpi eq, %2, %1 : vector<8x64xi32>
    %4 = arith.extui %3 : vector<8x64xi1> to vector<8x64xi32>
    %5 = arith.sitofp %4 : vector<8x64xi32> to vector<8x64xf32>
    %6 = arith.truncf %5 : vector<8x64xf32> to vector<8x64xbf16>
    %c0_1 = arith.constant 0 : index
    %c0_2 = arith.constant 0 : index
    %7 = vector.load %arg2[%c0_1, %c0_2] : memref<64x128xbf16, #tpu.memory_space<vmem>>, vector<64x128xbf16>
    %cst = arith.constant dense<0.000000e+00> : vector<8x128xf32>
    %8 = tpu.matmul %6, %7, %cst {dimension_numbers = #tpu.dot_dimension_numbers<[1], [0], [0], [1], [0, 0, 1, 1], [], []>} : vector<8x64xbf16>, vector<64x128xbf16>, vector<8x128xf32> -> vector<8x128xf32>
    %c0_3 = arith.constant 0 : index
    %c0_4 = arith.constant 0 : index
    %9 = vector.load %arg3[%c0_3, %c0_4] : memref<8x128xf32, #tpu.memory_space<vmem>>, vector<8x128xf32>
    tpu.vector_store %arg3[%c0_3, %c0_4], %8 {strides = array<i32>} : memref<8x128xf32, #tpu.memory_space<vmem>>, vector<8x128xf32>,
    return
  }
  func.func @transform_0(%arg0: i32) -> (i32, i32) {
    %c0_i32 = arith.constant 0 : i32
    %c0_i32_0 = arith.constant 0 : i32
    return %arg0, %c0_i32 : i32, i32
  }
  func.func @transform_1(%arg0: i32) -> (i32, i32) {
    %c0_i32 = arith.constant 0 : i32
    %c0_i32_0 = arith.constant 0 : i32
    %c0_i32_1 = arith.constant 0 : i32
    return %c0_i32, %c0_i32_0 : i32, i32
  }
  func.func @transform_2(%arg0: i32) -> (i32, i32) {
    %c0_i32 = arith.constant 0 : i32
    %c0_i32_0 = arith.constant 0 : i32
    return %arg0, %c0_i32 : i32, i32
  }
}

</mosaic_0001>

<bundles_post_ra>
// kernel: tpu_custom_call.1
= control target key start
LH: loop header
LB: loop body
LE: loop exit
PB: predicated region body
PF: predicated region fallthrough
CT: control target
= control target key end

     0   :  { %7 = vsyncpa [#allocation3], 0  ;;  %s675_s0 = inlined_call_operand.vmem [shape: s32[16,1], index: 0, kind: input, shape index: {}]   ;;  %s676_s1 = inlined_call_operand.hbm [shape: bf16[64,128], index: 1, kind: input, shape index: {}]   ;;  %s677_s2 = inlined_call_operand.hbm [shape: f32[16,128], index: 2, kind: output, shape index: {}]  }
   0x1   :  { %8 = vsyncpa [#allocation4], 0 }
   0x2   :  { %10 = vsyncpa [#allocation4 + $0x1], 0  ;;  %s540_s9 = smov 0   ;;  %s542_s10 = smov 0  }
   0x3   :  { %s544_s11 = smov 0   ;;  %s546_s12 = smov 0  }
   0x4 LB: > { %s561_s13 = sadd.s32 4294967295, %s516_s12   ;;  %s327_s14 = sadd.s32 4294967294, %s516_s12   ;;  %s516_s12 = sphi %s546_s12, %s693_s12   ;;  %s512_s11 = sphi %s544_s11, %s692_s11   ;;  %s508_s10 = sphi %s542_s10, %s691_s10   ;;  %s504_s9 = sphi %s540_s9, %s690_s9  }
   0x5   : > { %s565_s15 = sadd.s32 1, %s516_s12   ;;  %s70_s16 = sadd.s32 1, %s512_s11 }
   0x6   : > { %s67_s17 = ssub.s32 %s516_s12, %s565_s15  ;;  %p80_p0 = scmp.ne.s32.totalorder %s512_s11, %s508_s10 }
   0x7   : > { %p68_p1 = scmp.eq.s32.totalorder %s67_s17, 0  ;;  %p81_p2 = scmp.eq.s32.totalorder %s561_s13, 1 }
   0x8   : > { %p86_p3 = scmp.ne.s32.totalorder %s508_s10, %s504_s9  ;;  %p87_p4 = scmp.eq.s32.totalorder %s327_s14, 1 }
   0x9   : > { %s576_s18 = scalar_select %p68_p1, %s512_s11, %s70_s16  }
   0xa   : > { %p578_p5 = por %p81_p2, %p80_p0  ;;  %p582_p6 = por %p87_p4, %p86_p3 }
   0xb   : > { %p328_p7 = scmp.ge.s32.totalorder %s516_s12, 1  ;;  %p94_p8 = scmp.lt.s32.totalorder %s516_s12, 3 }
   0xc   : > { %s681_s19 = scalar_select %p578_p5, 1, 0 }
   0xd   : > { %s682_s20 = scalar_select %p582_p6, 1, 0 }
   0xe   : > { %p678_p9 = scmp.eq.s32.totalorder %s561_s13, 0  ;;  %p589_p10 = pnand %p328_p7, %p94_p8 }
   0xf   : > { %s518_s22 = smov [#allocation2]   ;;  %s422_s27 = scalar_lea.hbm %s676_s1, 512 }
  0x10   : > { %s683_s21 = scalar_select %p589_p10, 1, 0 }
  0x11   : > { %s106_s23 = sshll.u32 %s518_s22, 4  ;;  %p368_p11 = pneg %p589_p10  ;;  %s107_s23 = int_to_ptr.vmem [resolvable:$true] %s106_s23 }
  0x12   : > { %p423_p13 = scmp.ne.s32.totalorder %s676_s1, %s422_s27  ;;  %p429_p3 = scmp.lt.u32.totalorder %s422_s27, %s676_s1 }
  0x13   : > { %p597_p12 = pnand %p678_p9, %p368_p11 }
  0x15   : > { %p424_p0 = pneg %p597_p12 }
  0x17   : > { %p425_p1 = pnand %p424_p0, %p423_p13 }
  0x19   : > { %p426_p2 = pneg %p425_p1 }
  0x1b   : > { %p431_p4 = pnand %p429_p3, %p426_p2 }
  0x1d   : > { %434 = shalt.err (!%p431_p4)
}
  0x1e   : > { %s435_s4 = scalar_lea.vmem %s107_s23, 512  ;;  %p443_p9 = scmp.lt.s32.totalorder %s107_s23, %s107_s23 }
  0x1f   : > { %p436_p7 = scmp.ne.s32.totalorder %s107_s23, %s435_s4  ;;  %p444_p6 = scmp.lt.s32.totalorder %s435_s4, %s435_s4 }
  0x21   : > { %p438_p8 = pnand %p436_p7, %p424_p0  ;;  %p445_p5 = por %p444_p6, %p443_p9 }
  0x23   : > { %p439_p11 = pneg %p438_p8 }
  0x25   : > { %p446_p10 = pnand %p445_p5, %p439_p11 }
  0x27   : > { %449 = shalt.err (!%p446_p10)
}
  0x28   : > { %s519_s5 = smov 64   ;;  %s520_s6 = smov 4  }
  0x29   : > { %371 = dma.hbm_to_vmem [thread:$0]  (!%p597_p12), %s676_s1, 512, %s107_s23, [#allocation3], %s519_s5, %s519_s5, %s520_s6  }
  0x2a   : > { %p685_p13 = scmp.ne.s32.totalorder %s683_s21, 0 }
  0x2b   : > { %p686_p1 = scmp.eq.s32.totalorder (!%p685_p13), %s561_s13, 0 }
  0x2c   : > { %129 = sbr.rel (%p685_p13) target bundleno = 418 (0x1a2), region = 28 }
  0x33   : > { %495 = dma.done.wait (%p686_p1), [#allocation3], 512   ;;  %p687_p0 = pmov %p686_p1 }
  0x34   : > { %p150_p5 = scmp.lt.s32.totalorder %s561_s13, 1  ;;  %v521_v0 = vmov 0   ;;  %v522_v1 = vmov 0.0   ;;  %v418_v3 = vld [vmem:[#allocation2] sm:$0xff]   ;;  %v419_v4 = vld [vmem:[#allocation2 + $0x8] sm:$0xff]   ;;  %vm523_vm0 = vmmov 0   ;;  %v156_v7 = vlaneseq }
  0x35   : > { %497 = vsyncadd (%p687_p0), [#allocation3], 4294966784  ;;  %417 = vset.pattern.permute.xlu0 %v521_v0  ;;  %350 = vmatprep.subr.bf16.mxu0 %v522_v1  ;;  %v420_v5 = vld [vmem:[#allocation2 + $0x10] sm:$0xff]   ;;  %v421_v6 = vld [vmem:[#allocation2 + $0x18] sm:$0xff]   ;;  %vm197_vm2 = vcmask 523264   ;;  %s147_s23 = sand.u32 1, %s508_s10  }
  0x36   : > { %s151_s14 = scalar_select %p150_p5, %s561_s13, 1  ;;  %351 = vmatpush3.bf16.msra.mxu0 %v418_v3  ;;  %358 = vmatprep.mubr.msk.bf16.mxu0 %vm523_vm0, %v522_v1  ;;  %v157_v8 = vand.u32 127, %v156_v7 }
  0x37   : > { %352 = vmatprep.subr.bf16.mxu0 %v522_v1  ;;  %s333_s24 = sshll.u32 %s147_s23, 3  ;;  %s342_s27 = sshll.u32 %s561_s13, 7 }
  0x38   : > { %s334_s16 = sshll.u32 %s151_s14, 3  ;;  %s149_s25 = scalar_lea.vmem [#allocation5], %s333_s24 }
  0x39   : > { %s153_s21 = scalar_lea.vmem %s675_s0, %s334_s16  ;;  %s256_s26 = sshll.u32 %s149_s25, 4  ;;  %s630_s26 = int_to_ptr.vmem [resolvable:$true] %s256_s26 }
  0x3a   : > { %v155_v2 = vld [vmem:[%s153_s21] sm:$0xff]  ;;  %353 = vmatpush3.bf16.msra.mxu0 %v419_v4  ;;  %s635_s30 = scalar_lea.hbm %s677_s2, %s342_s27  ;;  %s243_s3 = scalar_lea.sflag [#allocation4], %s147_s23 }
  0x3b   : > { %159 = vperm.xlu0 %417, %v155_v2   ;;  %354 = vmatprep.subr.bf16.mxu0 %v522_v1  ;;  %s450_s4 = scalar_lea.vmem %s630_s26, 128  ;;  %p688_p9 = scmp.ne.s32.totalorder %s681_s19, 0 }
  0x3c   : > { %p451_p6 = scmp.ne.s32.totalorder %s630_s26, %s450_s4  ;;  %s524_s13 = smov [#allocation5]  }
  0x3d   : > { %s454_s5 = sshll.u32 %s524_s13, 4  ;;  %s455_s5 = int_to_ptr.vmem [resolvable:$false] %s454_s5 }
  0x3e   : > { %355 = vmatpush3.bf16.msra.mxu0 %v420_v5  ;;  %p452_p10 = pnand %p451_p6, %p688_p9  ;;  %s456_s6 = scalar_lea.vmem %s455_s5, 256 }
  0x3f   : > { %356 = vmatprep.subr.bf16.mxu0 %v522_v1  ;;  %p457_p2 = scmp.lt.s32.totalorder %s630_s26, %s455_s5  ;;  %p458_p3 = scmp.lt.s32.totalorder %s456_s6, %s450_s4 }
  0x40   : > { %p453_p12 = pneg %p452_p10 }
  0x41   : > { %p459_p4 = por %p458_p3, %p457_p2 }
  0x42   : > { %357 = vmatpush3.bf16.msra.mxu0 %v421_v6 }
  0x43   : > { %p460_p7 = pnand %p459_p4, %p453_p12 }
  0xba   : > { %v160_v9 = vpop.permute.xlu0 %159 }
  0xbb   : > { %vm161_vm1 = vcmp.eq.s32.totalorder %v160_v9, %v157_v8 }
  0xbc   : > { %v335_v10 = vsel %vm161_vm1, 1.0, %v522_v1 }
  0xbd   : > { %v164_v11 = vpack.c.bf16 %v335_v10, %v335_v10 }
  0xbf   : > { %359 = vmatmul.mubr.msk.bf16.vlgmr.msra.gmra.mrb[0].mxu0 %vm197_vm2, %v164_v11 }
 0x192   : > { %v235_v12 = vpop.f32.mrb[0].mxu0 }
 0x193   : > { %241 = vst [vmem:[%s149_s25] sm:$0xff] %v235_v12  ;;  %v360_v13 = vpop.f32.mrb[1].mxu0 }
 0x194   : > { %v238_v14 = vpop.f32.mrb[2].mxu0 }
 0x195   : > { %463 = shalt.err (!%p460_p7)
}
 0x196   : > { %s464_s7 = scalar_lea.hbm %s635_s30, 128  ;;  %s468_s16 = scalar_lea.hbm %s677_s2, 256 }
 0x197   : > { %p465_p8 = scmp.ne.s32.totalorder %s635_s30, %s464_s7  ;;  %p469_p1 = scmp.lt.u32.totalorder %s635_s30, %s677_s2 }
 0x198   : > { %p470_p0 = scmp.lt.u32.totalorder %s468_s16, %s464_s7  ;;  %p472_p6 = scmp.lt.u32.totalorder %s464_s7, %s635_s30 }
 0x199   : > { %p466_p11 = pnand %p465_p8, %p688_p9 }
 0x19a   : > { %p471_p5 = por %p470_p0, %p469_p1 }
 0x19b   : > { %p467_p13 = pneg %p466_p11 }
 0x19c   : > { %p473_p10 = por %p472_p6, %p471_p5 }
 0x19e   : > { %p474_p12 = pnand %p473_p10, %p467_p13 }
 0x1a0   : > { %477 = shalt.err (!%p474_p12)
}
 0x1a1   : > { %366 = dma.vmem_to_hbm [thread:$0]  (%p688_p9), %s630_s26, 128, %s635_s30, %s243_s3   ;;  %v361_v15 = vpop.f32.mrb[3].mxu0 }
 0x1a2 PF: > { %p378_p2 = scmp.ge.s32.totalorder %s516_s12, 2  ;;  %s268_s21 = sand.u32 1, %s504_s9  }
 0x1a3   : > { %p689_p3 = scmp.ne.s32.totalorder %s682_s20, 0  ;;  %s269_s23 = scalar_lea.sflag [#allocation4], %s268_s21 }
 0x1a5   : > { %p373_p4 = pnand %p378_p2, %p689_p3 }
 0x1a7   : > { %499 = dma.done.wait (!%p373_p4), %s269_s23, 128  }
 0x1a8   : > { %501 = vsyncadd (!%p373_p4), %s269_s23, 4294967168  ;;  %p13_p7 = scmp.ge.s32.totalorder %s565_s15, 4   ;;  %s690_s9 = smov %s508_s10 }
 0x1a9   : > { %s691_s10 = smov %s512_s11  ;;  %s692_s11 = smov %s576_s18 }
 0x1aa   : > { %s693_s12 = smov %s565_s15  ;;  %15 = sbr.rel (!%p13_p7) target bundleno = 4 (0x4), region = 68 }
 0x1b1   :  { %274 = vsyncpa [#allocation3], 1 }
 0x1b2   :  { %276 = vsyncpa [#allocation3 + $0x1], 1 }
 0x1b3   :  { %277 = vsyncpa [#allocation4], 1 }
 0x1b4   :  { %279 = vsyncpa [#allocation4 + $0x1], 1 }

</bundles_post_ra>
